<compile_context>
chip_gen: v7x
topology: tpu7x:2x2x1
jax: 0.10.0
libtpu: 0.0.40
codegen_flags: <defaults>
</compile_context>

<pallas_src>
import jax
import jax.numpy as jnp
from jax.experimental import pallas as pl
from jax.experimental.pallas import tpu as pltpu
from functools import partial


def attention_kernel(x_ref, wqkv_ref, wp_ref, bp_ref, o_ref, *, scale):
    Bb, N, C = x_ref.shape
    D = o_ref.shape[2]
    cdt = x_ref.dtype                      # MXU operand dtype (bf16 stays bf16)

    # (Bb, N, C) -> (Bb*N, C): leading-dim collapse, layout-free.
    x = x_ref[...].reshape(Bb * N, C)

    # Fused QKV projection: single MXU pass, f32 accumulation.
    qkv = jnp.dot(x, wqkv_ref[...], preferred_element_type=jnp.float32)   # (Bb*N, 3D)

    # Fold the softmax scale into q: N*D multiplies instead of N*N.
    q = (qkv[:, 0 * D:1 * D] * scale).reshape(Bb, N, D)
    k = qkv[:, 1 * D:2 * D].reshape(Bb, N, D)
    v = qkv[:, 2 * D:3 * D].reshape(Bb, N, D)       # kept f32 for the residual add

    # Scores: batched matmul contracting the last dims (no explicit k transpose).
    s = jnp.einsum("bnd,bmd->bnm", q.astype(cdt), k.astype(cdt),
                   preferred_element_type=jnp.float32)            # (Bb, N, N)

    # Softmax; statistics in f32.  NOTE: this keeps the full N x N tile per batch
    # element, which is fine for small/moderate N.  For production token counts
    # (T2T-ViT stage-1, N ~ 3136) switch to a KV-tiled online-softmax (flash)
    # variant -- mandatory on v7x's 64 MiB VMEM.
    s = s - jnp.max(s, axis=-1, keepdims=True)
    p = jnp.exp(s)
    p = p * pl.reciprocal(jnp.sum(p, axis=-1, keepdims=True), approx=True)

    # attn @ v : (Bb, N, N) x (Bb, N, D) -> (Bb, N, D)
    out = jnp.einsum("bnm,bmd->bnd", p.astype(cdt), v.astype(cdt),
                     preferred_element_type=jnp.float32)

    # proj (Linear with bias) on the flattened slab, then residual add of v.
    proj = jnp.dot(out.reshape(Bb * N, D).astype(cdt), wp_ref[...],
                   preferred_element_type=jnp.float32) + bp_ref[...]
    o_ref[...] = (v + proj.reshape(Bb, N, D)).astype(o_ref.dtype)


def _pick_block_b(B, N, max_rows=1024):
    # Largest divisor of B such that Bb*N rows keep the slab MXU-friendly while
    # bounding VMEM (double-buffered (Bb,N,C) input + (Bb,N,N) scores).
    bb = 1
    for cand in range(1, B + 1):
        if B % cand == 0 and cand * N <= max_rows:
            bb = cand
    return bb


def attention_forward(x, w_qkv, w_p, b_p, *, dim, num_heads, in_dim, block_b=None):
    """x: (B, N, C); w_qkv: (C, 3*D); w_p: (D, D); b_p: (D,) -> (B, N, D)."""
    if num_heads != 1:
        raise ValueError("kernel implements num_heads == 1 (the module's reshape "
                         "is only shape-consistent in that case)")
    B, N, C = x.shape
    D = in_dim
    assert w_qkv.shape == (C, 3 * D) and w_p.shape == (D, D) and b_p.shape == (D,)

    # Module quirk (kept intentionally): scale uses dim // num_heads, not in_dim.
    scale = (dim // num_heads) ** (-0.5)

    Bb = block_b if block_b is not None else _pick_block_b(B, N)
    assert B % Bb == 0

    kernel = partial(attention_kernel, scale=scale)
    return pl.pallas_call(
        kernel,
        out_shape=jax.ShapeDtypeStruct((B, N, D), x.dtype),
        grid_spec=pltpu.PrefetchScalarGridSpec(
            num_scalar_prefetch=0,
            grid=(B // Bb,),
            in_specs=[
                pl.BlockSpec((Bb, N, C), lambda b: (b, 0, 0)),
                pl.BlockSpec((C, 3 * D), lambda b: (0, 0)),
                pl.BlockSpec((D, D), lambda b: (0, 0)),
                pl.BlockSpec((1, D), lambda b: (0, 0)),
            ],
            out_specs=pl.BlockSpec((Bb, N, D), lambda b: (b, 0, 0)),
        ),
        compiler_params=pltpu.CompilerParams(
            dimension_semantics=("parallel",),
            vmem_limit_bytes=64 * 1024 * 1024,
        ),
    )(x, w_qkv, w_p, b_p.reshape(1, D))


def reference_forward(x, w_qkv, w_p, b_p, *, dim, num_heads, in_dim):
    # Pure-JAX reference mirroring the PyTorch forward (num_heads == 1).
    scale = (dim // num_heads) ** (-0.5)
    xf = x.astype(jnp.float32)
    qkv = xf @ w_qkv.astype(jnp.float32)
    q = qkv[..., 0 * in_dim:1 * in_dim]
    k = qkv[..., 1 * in_dim:2 * in_dim]
    v = qkv[..., 2 * in_dim:3 * in_dim]
    attn = jax.nn.softmax(jnp.einsum("bnd,bmd->bnm", q, k) * scale, axis=-1)
    out = jnp.einsum("bnm,bmd->bnd", attn, v)
    proj = out @ w_p.astype(jnp.float32) + b_p
    return (v + proj).astype(x.dtype)


if __name__ == "__main__":
    # Small, module-consistent shapes.
    B, N = 2, 8
    dim = 32          # C (input channels)
    in_dim = 16       # D (inner / output channels)
    num_heads = 1     # required by the module's reshape semantics

    key = jax.random.PRNGKey(0)
    kx, kqkv, kp, kb = jax.random.split(key, 4)

    x = jax.random.normal(kx, (B, N, dim), dtype=jnp.float32)

    # Deterministic parameter init (qkv has no bias: qkv_bias=False default).
    w_qkv = jax.random.normal(kqkv, (dim, 3 * in_dim), dtype=jnp.float32) * 0.05
    w_p = jax.random.normal(kp, (in_dim, in_dim), dtype=jnp.float32) * 0.05
    b_p = jax.random.normal(kb, (in_dim,), dtype=jnp.float32) * 0.05

    out = attention_forward(x, w_qkv, w_p, b_p,
                            dim=dim, num_heads=num_heads, in_dim=in_dim)
    out = jax.block_until_ready(out)

    ref = reference_forward(x, w_qkv, w_p, b_p,
                            dim=dim, num_heads=num_heads, in_dim=in_dim)
    assert out.shape == (B, N, in_dim)
    assert jnp.allclose(out, ref, atol=2e-3, rtol=2e-3), "mismatch vs reference"

    print("KERNEL_OK")
</pallas_src>

<mosaic_0001>
module attributes {stable_mosaic.version = 11 : i64} {
  func.func @attention_kernel(%arg0: i32, %arg1: memref<2x8x32xf32, #tpu.memory_space<vmem>>, %arg2: memref<32x48xf32, #tpu.memory_space<vmem>>, %arg3: memref<16x16xf32, #tpu.memory_space<vmem>>, %arg4: memref<1x16xf32, #tpu.memory_space<vmem>>, %arg5: memref<2x8x16xf32, #tpu.memory_space<vmem>>) attributes {dimension_semantics = [#tpu.dimension_semantics<parallel>], iteration_bounds = array<i64: 1>, scalar_prefetch = 0 : i64, scratch_operands = 0 : i64, tpu.core_type = #tpu.core_type<tc>, window_params = [{transform_indices = @transform_0, window_bounds = array<i64: 2, 8, 32>}, {pipeline_mode = #tpu.pipeline_mode<synchronous>, transform_indices = @transform_1, window_bounds = array<i64: 32, 48>}, {pipeline_mode = #tpu.pipeline_mode<synchronous>, transform_indices = @transform_2, window_bounds = array<i64: 16, 16>}, {pipeline_mode = #tpu.pipeline_mode<synchronous>, transform_indices = @transform_3, window_bounds = array<i64: 1, 16>}, {transform_indices = @transform_4, window_bounds = array<i64: 2, 8, 16>}]} {
    %c0 = arith.constant 0 : index
    %c0_0 = arith.constant 0 : index
    %c0_1 = arith.constant 0 : index
    %0 = vector.load %arg1[%c0, %c0_0, %c0_1] : memref<2x8x32xf32, #tpu.memory_space<vmem>>, vector<2x8x32xf32>
    %1 = vector.shape_cast %0 : vector<2x8x32xf32> to vector<16x32xf32>
    %c0_2 = arith.constant 0 : index
    %c0_3 = arith.constant 0 : index
    %2 = vector.load %arg2[%c0_2, %c0_3] : memref<32x48xf32, #tpu.memory_space<vmem>>, vector<32x48xf32>
    %cst = arith.constant dense<0.000000e+00> : vector<16x48xf32>
    %3 = tpu.matmul %1, %2, %cst {dimension_numbers = #tpu.dot_dimension_numbers<[1], [0], [0], [1], [0, 0, 1, 1], [], []>} : vector<16x32xf32>, vector<32x48xf32>, vector<16x48xf32> -> vector<16x48xf32>
    %4 = vector.extract_strided_slice %3 {offsets = [0, 0], sizes = [16, 16], strides = [1, 1]} : vector<16x48xf32> to vector<16x16xf32>
    %cst_4 = arith.constant 0.176776692 : f32
    %5 = vector.broadcast %cst_4 : f32 to vector<16x16xf32>
    %6 = arith.mulf %4, %5 : vector<16x16xf32>
    %7 = vector.shape_cast %6 : vector<16x16xf32> to vector<2x8x16xf32>
    %8 = vector.extract_strided_slice %3 {offsets = [0, 16], sizes = [16, 16], strides = [1, 1]} : vector<16x48xf32> to vector<16x16xf32>
    %9 = vector.shape_cast %8 : vector<16x16xf32> to vector<2x8x16xf32>
    %10 = vector.extract_strided_slice %3 {offsets = [0, 32], sizes = [16, 16], strides = [1, 1]} : vector<16x48xf32> to vector<16x16xf32>
    %11 = vector.shape_cast %10 : vector<16x16xf32> to vector<2x8x16xf32>
    "tpu.trace_start"() <{level = 10 : i32, message = "bnd,bmd->bnm"}> : () -> ()
    %cst_5 = arith.constant dense<0.000000e+00> : vector<2x8x8xf32>
    %12 = tpu.matmul %7, %9, %cst_5 {dimension_numbers = #tpu.dot_dimension_numbers<[2], [2], [1], [1], [0, 0, 0, 1, 1, 1], [0], [0]>} : vector<2x8x16xf32>, vector<2x8x16xf32>, vector<2x8x8xf32> -> vector<2x8x8xf32>
    "tpu.trace_stop"() : () -> ()
    %cst_6 = arith.constant dense<0xFF800000> : vector<2x8xf32>
    %13 = vector.multi_reduction <maximumf>, %12, %cst_6 [2] : vector<2x8x8xf32> to vector<2x8xf32>
    %14 = vector.shape_cast %13 : vector<2x8xf32> to vector<2x8x1xf32>
    %15 = vector.broadcast %14 : vector<2x8x1xf32> to vector<2x8x8xf32>
    %16 = arith.subf %12, %15 : vector<2x8x8xf32>
    %17 = math.exp %16 : vector<2x8x8xf32>
    %cst_7 = arith.constant dense<0.000000e+00> : vector<2x8xf32>
    %18 = vector.multi_reduction <add>, %17, %cst_7 [2] : vector<2x8x8xf32> to vector<2x8xf32>
    %19 = vector.shape_cast %18 : vector<2x8xf32> to vector<2x8x1xf32>
    %20 = tpu.reciprocal %19 {approx = true} : vector<2x8x1xf32> -> vector<2x8x1xf32>
    %21 = vector.broadcast %20 : vector<2x8x1xf32> to vector<2x8x8xf32>
    %22 = arith.mulf %17, %21 : vector<2x8x8xf32>
    "tpu.trace_start"() <{level = 10 : i32, message = "bnm,bmd->bnd"}> : () -> ()
    %cst_8 = arith.constant dense<0.000000e+00> : vector<2x8x16xf32>
    %23 = tpu.matmul %22, %11, %cst_8 {dimension_numbers = #tpu.dot_dimension_numbers<[2], [1], [1], [2], [0, 0, 0, 1, 1, 2], [0], [0]>} : vector<2x8x8xf32>, vector<2x8x16xf32>, vector<2x8x16xf32> -> vector<2x8x16xf32>
    "tpu.trace_stop"() : () -> ()
    %24 = vector.shape_cast %23 : vector<2x8x16xf32> to vector<16x16xf32>
    %c0_9 = arith.constant 0 : index
    %c0_10 = arith.constant 0 : index
    %25 = vector.load %arg3[%c0_9, %c0_10] : memref<16x16xf32, #tpu.memory_space<vmem>>, vector<16x16xf32>
    %cst_11 = arith.constant dense<0.000000e+00> : vector<16x16xf32>
    %26 = tpu.matmul %24, %25, %cst_11 {dimension_numbers = #tpu.dot_dimension_numbers<[1], [0], [0], [1], [0, 0, 1, 1], [], []>} : vector<16x16xf32>, vector<16x16xf32>, vector<16x16xf32> -> vector<16x16xf32>
    %c0_12 = arith.constant 0 : index
    %c0_13 = arith.constant 0 : index
    %27 = vector.load %arg4[%c0_12, %c0_13] : memref<1x16xf32, #tpu.memory_space<vmem>>, vector<1x16xf32>
    %28 = vector.broadcast %27 : vector<1x16xf32> to vector<16x16xf32>
    %29 = arith.addf %26, %28 : vector<16x16xf32>
    %30 = vector.shape_cast %29 : vector<16x16xf32> to vector<2x8x16xf32>
    %31 = arith.addf %11, %30 : vector<2x8x16xf32>
    %c0_14 = arith.constant 0 : index
    %c0_15 = arith.constant 0 : index
    %c0_16 = arith.constant 0 : index
    %32 = vector.load %arg5[%c0_14, %c0_15, %c0_16] : memref<2x8x16xf32, #tpu.memory_space<vmem>>, vector<2x8x16xf32>
    tpu.vector_store %arg5[%c0_14, %c0_15, %c0_16], %31 {strides = array<i32>} : memref<2x8x16xf32, #tpu.memory_space<vmem>>, vector<2x8x16xf32>,
    return
  }
  func.func @transform_0(%arg0: i32) -> (i32, i32, i32) {
    %c0_i32 = arith.constant 0 : i32
    %c0_i32_0 = arith.constant 0 : i32
    %c0_i32_1 = arith.constant 0 : i32
    return %arg0, %c0_i32, %c0_i32_0 : i32, i32, i32
  }
  func.func @transform_1(%arg0: i32) -> (i32, i32) {
    %c0_i32 = arith.constant 0 : i32
    %c0_i32_0 = arith.constant 0 : i32
    %c0_i32_1 = arith.constant 0 : i32
    return %c0_i32, %c0_i32_0 : i32, i32
  }
  func.func @transform_2(%arg0: i32) -> (i32, i32) {
    %c0_i32 = arith.constant 0 : i32
    %c0_i32_0 = arith.constant 0 : i32
    %c0_i32_1 = arith.constant 0 : i32
    return %c0_i32, %c0_i32_0 : i32, i32
  }
  func.func @transform_3(%arg0: i32) -> (i32, i32) {
    %c0_i32 = arith.constant 0 : i32
    %c0_i32_0 = arith.constant 0 : i32
    %c0_i32_1 = arith.constant 0 : i32
    return %c0_i32, %c0_i32_0 : i32, i32
  }
  func.func @transform_4(%arg0: i32) -> (i32, i32, i32) {
    %c0_i32 = arith.constant 0 : i32
    %c0_i32_0 = arith.constant 0 : i32
    %c0_i32_1 = arith.constant 0 : i32
    return %arg0, %c0_i32, %c0_i32_0 : i32, i32, i32
  }
}

</mosaic_0001>

<bundles_post_ra>
// kernel: tpu_custom_call.1
= control target key start
LH: loop header
LB: loop body
LE: loop exit
PB: predicated region body
PF: predicated region fallthrough
CT: control target
= control target key end

     0   :  { %9 = vsyncpa [#allocation3], 0  ;;  %s989_s0 = inlined_call_operand.hbm [shape: f32[2,8,32], index: 0, kind: input, shape index: {}]   ;;  %s990_s1 = inlined_call_operand.hbm [shape: f32[32,48], index: 1, kind: input, shape index: {}]   ;;  %s991_s2 = inlined_call_operand.hbm [shape: f32[16,16], index: 2, kind: input, shape index: {}]   ;;  %s992_s3 = inlined_call_operand.hbm [shape: f32[1,16], index: 3, kind: input, shape index: {}]   ;;  %s993_s4 = inlined_call_operand.hbm [shape: f32[2,8,16], index: 4, kind: output, shape index: {}]  }
   0x1   :  { %10 = vsyncpa [#allocation6], 0 }
   0x2   :  { %11 = vsyncpa [#allocation9], 0 }
   0x3   :  { %12 = vsyncpa [#allocation4], 0  ;;  %s839_s15 = smov [#allocation5]   ;;  %s840_s17 = smov [#allocation2]  }
   0x4   :  { %s30_s16 = sshll.u32 %s839_s15, 4  ;;  %s18_s18 = sshll.u32 %s840_s17, 4  ;;  %s31_s16 = int_to_ptr.vmem [resolvable:$true] %s30_s16  ;;  %s876_s18 = int_to_ptr.vmem [resolvable:$true] %s18_s18 }
   0x5   :  { %s721_s21 = scalar_lea.hbm %s990_s1, 512 }
   0x6   :  { %p722_p0 = scmp.ne.s32.totalorder %s990_s1, %s721_s21  ;;  %p725_p1 = scmp.lt.u32.totalorder %s721_s21, %s990_s1 }
   0x8   :  { %p727_p2 = pnand %p725_p1, %p722_p0 }
   0xa   :  { %730 = shalt.err (!%p727_p2)
}
   0xb   :  { %s731_s26 = scalar_lea.vmem %s31_s16, 512  ;;  %p736_p4 = scmp.lt.s32.totalorder %s31_s16, %s31_s16 }
   0xc   :  { %p732_p3 = scmp.ne.s32.totalorder %s31_s16, %s731_s26  ;;  %p737_p5 = scmp.lt.s32.totalorder %s731_s26, %s731_s26 }
   0xe   :  { %p738_p6 = por %p737_p5, %p736_p4 }
  0x10   :  { %p739_p7 = pnand %p738_p6, %p732_p3 }
  0x12   :  { %742 = shalt.err (!%p739_p7)
}
  0x13   :  { %s841_s27 = smov 128   ;;  %s842_s28 = smov 8  }
  0x14   :  { %36 = dma.hbm_to_vmem [thread:$0]  %s990_s1, 512, %s31_s16, [#allocation6], %s841_s27, %s841_s27, %s842_s28  }
  0x15   :  { %s743_s7 = scalar_lea.hbm %s989_s0, 256 }
  0x16   :  { %p744_p8 = scmp.ne.s32.totalorder %s989_s0, %s743_s7  ;;  %p747_p9 = scmp.lt.u32.totalorder %s743_s7, %s989_s0 }
  0x18   :  { %p749_p10 = pnand %p747_p9, %p744_p8 }
  0x1a   :  { %752 = shalt.err (!%p749_p10)
}
  0x1b   :  { %s753_s12 = scalar_lea.vmem %s876_s18, 256  ;;  %p758_p12 = scmp.lt.s32.totalorder %s876_s18, %s876_s18 }
  0x1c   :  { %p754_p11 = scmp.ne.s32.totalorder %s876_s18, %s753_s12  ;;  %p759_p13 = scmp.lt.s32.totalorder %s753_s12, %s753_s12 }
  0x1e   :  { %p760_p0 = por %p759_p13, %p758_p12 }
  0x20   :  { %p761_p1 = pnand %p760_p0, %p754_p11 }
  0x22   :  { %764 = shalt.err (!%p761_p1)
}
  0x23   :  { %24 = dma.hbm_to_vmem [thread:$0]  %s989_s0, 256, %s876_s18, [#allocation3], %s841_s27, %s841_s27, %s842_s28  }
  0x24   :  { %s843_s14 = smov [#allocation7]   ;;  %s844_s16 = smov [#allocation8]  }
  0x25   :  { %s42_s15 = sshll.u32 %s843_s14, 4  ;;  %s55_s17 = sshll.u32 %s844_s16, 4  ;;  %s43_s15 = int_to_ptr.vmem [resolvable:$true] %s42_s15  ;;  %s56_s17 = int_to_ptr.vmem [resolvable:$true] %s55_s17 }
  0x26   :  { %s765_s21 = scalar_lea.hbm %s991_s2, 256 }
  0x27   :  { %p766_p2 = scmp.ne.s32.totalorder %s991_s2, %s765_s21  ;;  %p769_p3 = scmp.lt.u32.totalorder %s765_s21, %s991_s2 }
  0x29   :  { %p771_p4 = pnand %p769_p3, %p766_p2 }
  0x2b   :  { %774 = shalt.err (!%p771_p4)
}
  0x2c   :  { %s775_s0 = scalar_lea.vmem %s43_s15, 256  ;;  %p780_p6 = scmp.lt.s32.totalorder %s43_s15, %s43_s15 }
  0x2d   :  { %p776_p5 = scmp.ne.s32.totalorder %s43_s15, %s775_s0  ;;  %p781_p7 = scmp.lt.s32.totalorder %s775_s0, %s775_s0 }
  0x2f   :  { %p782_p8 = por %p781_p7, %p780_p6 }
  0x31   :  { %p783_p9 = pnand %p782_p8, %p776_p5 }
  0x33   :  { %786 = shalt.err (!%p783_p9)
}
  0x34   :  { %48 = dma.hbm_to_vmem [thread:$0]  %s991_s2, 256, %s43_s15, [#allocation6], %s841_s27, %s841_s27, %s842_s28  }
  0x35   :  { %s787_s5 = scalar_lea.hbm %s992_s3, 16 }
  0x36   :  { %p788_p10 = scmp.ne.s32.totalorder %s992_s3, %s787_s5  ;;  %p791_p11 = scmp.lt.u32.totalorder %s787_s5, %s992_s3 }
  0x38   :  { %p793_p12 = pnand %p791_p11, %p788_p10 }
  0x3a   :  { %796 = shalt.err (!%p793_p12)
}
  0x3b   :  { %s797_s10 = scalar_lea.vmem %s56_s17, 16  ;;  %s801_s11 = scalar_lea.vmem %s56_s17, 32 }
  0x3c   :  { %p798_p13 = scmp.ne.s32.totalorder %s56_s17, %s797_s10  ;;  %p802_p0 = scmp.lt.s32.totalorder %s56_s17, %s56_s17 }
  0x3d   :  { %p803_p1 = scmp.lt.s32.totalorder %s801_s11, %s797_s10 }
  0x3f   :  { %p804_p2 = por %p803_p1, %p802_p0 }
  0x41   :  { %p805_p3 = pnand %p804_p2, %p798_p13 }
  0x43   :  { %808 = shalt.err (!%p805_p3)
}
  0x44   :  { %58 = dma.hbm_to_vmem [thread:$0]  %s992_s3, 16, %s56_s17, [#allocation9]  }
  0x45   :  { %831 = dma.done.wait [#allocation3], 256  }
  0x46   :  { %832 = vsyncadd [#allocation3], 4294967040 }
  0x47   :  { %833 = dma.done.wait [#allocation6], 768  }
  0x48   :  { %834 = vsyncadd [#allocation6], 4294966528 }
  0x49   :  { %835 = dma.done.wait [#allocation9], 16  }
  0x4a   :  { %836 = vsyncadd [#allocation9], 4294967280  ;;  %vm77_vm0 = vcmask 261120   ;;  %v73_v0 = vld [vmem:[#allocation5] sm:$0xff]  ;;  %v74_v1 = vld [vmem:[#allocation5 + $0x8] sm:$0xff]  ;;  %v845_v8 = vmov 0.0  }
  0x4b   :  { %v75_v2 = vld [vmem:[#allocation5 + $0x10] sm:$0xff]  ;;  %v689_v3 = vpack.c.bf16 %v74_v1, %v73_v0  ;;  %v76_v4 = vld [vmem:[#allocation5 + $0x18] sm:$0xff]  ;;  %662 = vmatprep.subr.mxu1 %v845_v8  ;;  %vm846_vm1 = vmmov 0   ;;  %s847_s3 = smov 112   ;;  %vm164_vm2 = vcmask 130048   ;;  %vm318_vm3 = vcmask 64512  }
  0x4c   :  { %v71_v5 = vld [vmem:[#allocation2] sm:$0xff]  ;;  %v693_v6 = vpack.c.bf16 %v76_v4, %v75_v2  ;;  %v72_v7 = vld [vmem:[#allocation2 + $0x8] sm:$0xff]  ;;  %664 = vmatprep.mubr.msk.f32.mxu1 %vm846_vm1, %v845_v8  ;;  %s848_s1 = smov 96   ;;  %v493_v39 = vld [vmem:[#allocation7] sm:$0xff]  ;;  %s849_s13 = smov 32  }
  0x4d   :  { %659 = vmatprep.mubr.msk.f32.mxu0 %vm77_vm0, %v71_v5  ;;  %690 = vmatprep.subr.bf16.mxu0 %v689_v3  ;;  %v494_v40 = vld [vmem:[#allocation7 + $0x8] sm:$0xff]  ;;  %v630_v46 = vld [vmem:[#allocation8] ss:$0 sm:$0xff]  ;;  %s850_s14 = smov [#allocation10]  }
  0x4e   :  { %692 = vmatpush3.bf16.msra.mxu0 %v689_v3  ;;  %v697_v41 = vpack.c.bf16 %v494_v40, %v493_v39  ;;  %s608_s15 = sshll.u32 %s850_s14, 4  ;;  %s609_s15 = int_to_ptr.vmem [resolvable:$true] %s608_s15 }
  0x4f   :  { %694 = vmatprep.subr.bf16.mxu0 %v693_v6  ;;  %s809_s16 = scalar_lea.vmem %s609_s15, 256  ;;  %p814_p5 = scmp.lt.s32.totalorder %s609_s15, %s609_s15 }
  0x50   :  { %p810_p4 = scmp.ne.s32.totalorder %s609_s15, %s809_s16  ;;  %p815_p6 = scmp.lt.s32.totalorder %s809_s16, %s809_s16 }
  0x52   :  { %696 = vmatpush3.bf16.msra.mxu0 %v693_v6  ;;  %p816_p7 = por %p815_p6, %p814_p5 }
  0x53   :  { %672 = vmatprep.subr.mxu0 %v845_v8 }
  0x54   :  { %p817_p8 = pnand %p816_p7, %p810_p4 }
  0x55   :  { %660 = vmatmul.mubr.msk.f32.vlgmr.msra.gmra.mrb[0].mxu0 %vm77_vm0, %v72_v7 }
  0x56   :  { %674 = vmatprep.mubr.msk.f32.mxu0 %vm846_vm1, %v845_v8 }
 0x128   :  { %v942_v9 = vpop.f32.mrb[0].mxu0 }
 0x129   :  { %v944_v10 = vpop.f32.mrb[1].mxu0  ;;  %v160_v14 = vmul.f32 0.17677669, %v942_v9 }
 0x12a   :  { %162 = vrot.lane.b32.xlu0 %v944_v10, %s847_s3  ;;  %v159_v12 = vmul.f32 0.17677669, %v944_v10 }
 0x12e   :  { %241 = vrot.lane.b32.xlu0 %v942_v9, %s847_s3 }
 0x19c   :  { %v163_v11 = vpop.permute.xlu0 %162 }
 0x19d   :  { %663 = vmatpush3.xpose.msk.msra.mxu1 %vm164_vm2, %v163_v11 }
 0x19e   :  { %667 = vmatprep.subr.mxu1 %v845_v8 }
 0x1a0   :  { %v242_v13 = vpop.permute.xlu0 %241  ;;  %665 = vmatmul.mubr.msk.f32.vlgmr.msra.gmra.mrb[0].mxu1 %vm164_vm2, %v159_v12 }
 0x1a1   :  { %668 = vmatpush3.xpose.msk.msra.mxu1 %vm164_vm2, %v242_v13  ;;  %669 = vmatprep.mubr.msk.f32.mxu1 %vm846_vm1, %v845_v8 }
 0x1a2   :  { %677 = vmatprep.subr.mxu1 %v845_v8 }
 0x1a4   :  { %670 = vmatmul.mubr.msk.f32.vlgmr.msra.gmra.mrb[2].mxu1 %vm164_vm2, %v160_v14 }
 0x1a5   :  { %679 = vmatprep.mubr.msk.f32.mxu1 %vm846_vm1, %v845_v8 }
 0x273   :  { %v236_v15 = vpop.f32.mrb[0].mxu1 }
 0x274   :  { %v666_v16 = vpop.f32.mrb[1].mxu1  ;;  %v319_v17 = vsel %vm318_vm3, %v236_v15, -inf }
 0x275   :  { %320 = vmax.xlane.f32.xlu1 %v319_v17 }
 0x277   :  { %v314_v18 = vpop.f32.mrb[2].mxu1 }
 0x278   :  { %v671_v19 = vpop.f32.mrb[3].mxu1  ;;  %v322_v20 = vsel %vm318_vm3, %v314_v18, -inf }
 0x279   :  { %323 = vmax.xlane.f32.xlu1 %v322_v20 }
 0x28a   :  { %341 = vrot.lane.b32.xlu1 %v944_v10, %s848_s1 }
 0x302   :  { %v321_v21 = vpop.xlane.xlu1 %320 }
 0x303   :  { %v325_v22 = vsub.f32 %v236_v15, %v321_v21 }
 0x305   :  { %v327_v23 = vmul.f32 1.442695, %v325_v22 }
 0x306   :  { %v324_v24 = vpop.xlane.xlu1 %323 }
 0x307   :  { %713 = vpow2.f32 %v327_v23  ;;  %v326_v25 = vsub.f32 %v314_v18, %v324_v24 }
 0x309   :  { %v329_v26 = vmul.f32 1.442695, %v326_v25 }
 0x30a   :  { %v342_v27 = vpop.permute.xlu1 %341 }
 0x30b   :  { %715 = vpow2.f32 %v329_v26  ;;  %673 = vmatpush3.msra.mxu0 %v342_v27 }
 0x30c   :  { %698 = vmatprep.subr.bf16.mxu0 %v697_v41 }
 0x311   :  { %v714_v28 = vpop.eup %713 }
 0x312   :  { %v331_v29 = vsel %vm318_vm3, %v714_v28, 0.0 }
 0x313   :  { %332 = vadd.xlane.f32.xlu0 %v331_v29 }
 0x315   :  { %v716_v30 = vpop.eup %715 }
 0x316   :  { %v334_v31 = vsel %vm318_vm3, %v716_v30, 0.0 }
 0x317   :  { %335 = vadd.xlane.f32.xlu1 %v334_v31 }
 0x328   :  { %417 = vrot.lane.b32.xlu1 %v942_v9, %s848_s1 }
 0x3a0   :  { %v333_v32 = vpop.xlane.xlu0 %332 }
 0x3a1   :  { %717 = vrcp.f32 %v333_v32 }
 0x3a4   :  { %v336_v33 = vpop.xlane.xlu1 %335 }
 0x3a5   :  { %719 = vrcp.f32 %v336_v33 }
 0x3a8   :  { %v418_v34 = vpop.permute.xlu1 %417 }
 0x3a9   :  { %678 = vmatpush3.msra.mxu1 %v418_v34 }
 0x3ab   :  { %v718_v35 = vpop.eup %717 }
 0x3ac   :  { %v339_v36 = vmul.f32 %v718_v35, %v714_v28 }
 0x3ae   :  { %675 = vmatmul.mubr.msk.f32.vlgmr.msra.gmra.mrb[2].mxu0 %vm318_vm3, %v339_v36 }
 0x3af   :  { %v720_v37 = vpop.eup %719  ;;  %700 = vmatpush3.bf16.msra.mxu0 %v697_v41 }
 0x3b0   :  { %v340_v38 = vmul.f32 %v720_v37, %v716_v30 }
 0x3b2   :  { %680 = vmatmul.mubr.msk.f32.vlgmr.msra.gmra.mrb[4].mxu1 %vm318_vm3, %v340_v38 }
 0x481   :  { %v413_v42 = vpop.f32.mrb[2].mxu0 }
 0x482   :  { %v676_v43 = vpop.f32.mrb[3].mxu0  ;;  %686 = vmatprep.mubr.msk.f32.mxu0 %vm164_vm2, %v413_v42 }
 0x485   :  { %v489_v44 = vpop.f32.mrb[4].mxu1 }
 0x486   :  { %v681_v45 = vpop.f32.mrb[5].mxu1  ;;  %687 = vmatmul.mubr.msk.f32.vlgmr.msra.gmra.mrb[4].mxu0 %vm164_vm2, %v489_v44 }
 0x559   :  { %v688_v47 = vpop.f32.mrb[4].mxu0 }
 0x55a   :  { %v574_v48 = vpop.f32.mrb[5].mxu0  ;;  %v580_v50 = vadd.f32 %v688_v47, %v630_v46 }
 0x55b   :  { %v575_v49 = vadd.f32 %v630_v46, %v574_v48 }
 0x55d   :  { %585 = vrot.lane.b32.xlu1 %v575_v49, %s849_s13 }
 0x561   :  { %587 = vrot.lane.b32.xlu1 %v580_v50, %s849_s13 }
 0x5cf   :  { %v586_v51 = vpop.permute.xlu1 %585 }
 0x5d0   :  { %v591_v52 = vadd.f32 %v586_v51, %v944_v10 }
 0x5d2   :  { %595 = vrot.lane.b32.xlu0 %v591_v52, %s848_s1 }
 0x5d3   :  { %v588_v53 = vpop.permute.xlu1 %587 }
 0x5d4   :  { %v592_v54 = vadd.f32 %v942_v9, %v588_v53 }
 0x5d6   :  { %597 = vrot.lane.b32.xlu1 %v592_v54, %s848_s1 }
 0x644   :  { %v596_v55 = vpop.permute.xlu0 %595 }
 0x645   :  { %601 = vst.msk [vmem:[#allocation10] sm:$0xff] %vm164_vm2, %v596_v55 }
 0x648   :  { %v598_v56 = vpop.permute.xlu1 %597 }
 0x649   :  { %602 = vst.msk [vmem:[#allocation10 + $0x8] sm:$0xff] %vm164_vm2, %v598_v56 }
 0x64a   :  { %820 = shalt.err (!%p817_p8)
}
 0x64b   :  { %s821_s20 = scalar_lea.hbm %s993_s4, 256 }
 0x64c   :  { %p822_p9 = scmp.ne.s32.totalorder %s993_s4, %s821_s20  ;;  %p825_p10 = scmp.lt.u32.totalorder %s821_s20, %s993_s4 }
 0x64e   :  { %p827_p11 = pnand %p825_p10, %p822_p9 }
 0x650   :  { %830 = shalt.err (!%p827_p11)
}
 0x651   :  { %614 = dma.vmem_to_hbm [thread:$0]  %s609_s15, 256, %s993_s4, [#allocation4], %s841_s27, %s841_s27, %s842_s28  }
 0x652   :  { %837 = dma.done.wait [#allocation4], 256  }
 0x653   :  { %838 = vsyncadd [#allocation4], 4294967040 }
 0x654   :  { %618 = vsyncpa [#allocation3], 1 }
 0x655   :  { %619 = vsyncpa [#allocation6], 1 }
 0x656   :  { %620 = vsyncpa [#allocation9], 1 }
 0x657   :  { %621 = vsyncpa [#allocation4], 1 }

</bundles_post_ra>
